<compile_context>
chip_gen: v7x
topology: tpu7x:2x2x1
jax: 0.10.0
libtpu: 0.0.40
codegen_flags: <defaults>
</compile_context>

<pallas_src>
import math

import jax
import jax.numpy as jnp
from jax.experimental import pallas as pl
from jax.experimental.pallas import tpu as pltpu


def _addition_kernel(x_ref, y_ref, g_ref, o_ref):
    # x_ref, y_ref, o_ref: (tile_rows, lane) VMEM tiles.
    # g_ref: (1, lane) f32 gamma row (per-channel scale tiled with period dim),
    #        broadcast over the sublane (row) axis.  Pure VPU work; HBM bound.
    x = x_ref[...].astype(jnp.float32)
    y = y_ref[...].astype(jnp.float32)
    o_ref[...] = (x + y * g_ref[...]).astype(o_ref.dtype)


def _cdiv(a: int, b: int) -> int:
    return -(-a // b)


def _round_up(a: int, m: int) -> int:
    return _cdiv(a, m) * m


def addition(
    x: jax.Array,
    y: jax.Array,
    gamma: jax.Array,
    *,
    target_lane: int = 2048,
    target_tile_bytes: int = 4 << 20,
) -> jax.Array:
    """x + gamma * y with gamma broadcast along the last dim (channels-last).

    x, y: (..., dim); gamma: (dim,).  (For layer_scale <= 0 the PyTorch module
    is x + y, i.e. pass gamma = ones(dim).)
    """
    assert x.shape == y.shape, (x.shape, y.shape)
    assert x.dtype == y.dtype, (x.dtype, y.dtype)  # avoid silent promotion drift
    assert jnp.issubdtype(x.dtype, jnp.floating), x.dtype  # f32 compute path only
    dim = x.shape[-1]
    assert gamma.shape == (dim,), (gamma.shape, dim)

    orig_shape = x.shape
    total = x.size
    out_dtype = x.dtype
    itemsize = jnp.dtype(x.dtype).itemsize

    gamma_f32 = gamma.astype(jnp.float32)

    # ---- choose the folded row width (lane) --------------------------------
    # lane must be a multiple of lcm(dim, 128): multiple of 128 for unmasked
    # lane-dense stores, multiple of dim so gamma's pattern repeats per row.
    base = (dim * 128) // math.gcd(dim, 128)  # lcm(dim, 128)
    kmax = max(1, target_lane // base)
    lane = None
    for k in range(kmax, 0, -1):           # prefer the widest lane that divides
        if total % (base * k) == 0:        # total exactly -> zero-copy reshapes
            lane = base * k
            break
    if lane is None:
        lane = base * kmax                 # remainder handled as pure-JAX tail

    rows = total // lane
    bulk = rows * lane
    tail = total - bulk                    # < lane, and a whole number of dims

    if rows == 0:
        # Input smaller than a single folded row: not worth a kernel launch.
        return (x.astype(jnp.float32) + gamma_f32 * y.astype(jnp.float32)
                ).astype(out_dtype)

    # ---- choose the row-tile size -------------------------------------------
    # Budget in f32-equivalent bytes so 3 streams x 2 pipeline buffers stay
    # around ~24 MiB resident regardless of the input dtype.
    tile_rows = max(8, (target_tile_bytes // (lane * 4)) // 8 * 8)
    if rows <= 8:
        tile_rows = rows                   # single full-extent block
    else:
        # Keep >=2 grid steps (>=4 for larger inputs) so both v7x TensorCores
        # get work under dimension_semantics=("parallel",).
        min_steps = 4 if rows >= 64 else 2
        tile_rows = min(tile_rows, _round_up(_cdiv(rows, min_steps), 8))
        tile_rows = max(8, min(tile_rows, (rows // 8) * 8))
    grid_steps = _cdiv(rows, tile_rows)    # partial last block masked by Pallas

    # ---- explicit VMEM budget so the scoped default (16 MiB on v5e, 32 MiB on
    # v6e/v7x) never forces a shallower pipeline or a compile failure.
    tile_bytes = tile_rows * lane * itemsize
    f32_tmp = 0 if x.dtype == jnp.float32 else 2 * tile_rows * lane * 4
    vmem_limit = int(3 * 2 * tile_bytes + f32_tmp + 8 * lane * 4 + (4 << 20))
    vmem_limit = max(8 << 20, min(vmem_limit, 48 << 20))  # stay under v7x 64 MiB

    xf = x.reshape(-1)
    yf = y.reshape(-1)
    # Common case (tail == 0): full-extent slice + reshape, i.e. free views.
    x2 = xf[:bulk].reshape(rows, lane)
    y2 = yf[:bulk].reshape(rows, lane)

    # gamma tiled once to the folded lane width; stays VMEM-resident across the
    # whole grid (constant index_map).  Under jit with a constant gamma this
    # tile is folded away; callers may also precompute/cache it externally.
    g2 = jnp.tile(gamma_f32, lane // dim).reshape(1, lane)

    out2 = pl.pallas_call(
        _addition_kernel,
        out_shape=jax.ShapeDtypeStruct((rows, lane), out_dtype),
        grid=(grid_steps,),
        in_specs=[
            pl.BlockSpec((tile_rows, lane), lambda i: (i, 0)),
            pl.BlockSpec((tile_rows, lane), lambda i: (i, 0)),
            pl.BlockSpec((1, lane), lambda i: (0, 0)),   # resident gamma row
        ],
        out_specs=pl.BlockSpec((tile_rows, lane), lambda i: (i, 0)),
        compiler_params=pltpu.CompilerParams(
            dimension_semantics=("parallel",),           # shard across v7x TCs
            vmem_limit_bytes=vmem_limit,
        ),
    )(x2, y2, g2)

    if tail == 0:
        return out2.reshape(orig_shape)

    # Uncommon path (lane does not divide total): remainder is a whole number
    # of channel groups -> tiny pure-JAX add, then stitch the stream back.
    x_t = xf[bulk:].reshape(-1, dim).astype(jnp.float32)
    y_t = yf[bulk:].reshape(-1, dim).astype(jnp.float32)
    out_t = (x_t + gamma_f32 * y_t).astype(out_dtype).reshape(-1)
    return jnp.concatenate([out2.reshape(-1), out_t]).reshape(orig_shape)


if __name__ == "__main__":
    # Module config (deterministic init): Addition(dim=32, layer_scale=1e-5)
    dim = 32
    layer_scale = 1e-5
    # LayerScale.__init__ -> gamma = layer_scale * ones(dim)
    gamma = jnp.full((dim,), layer_scale, dtype=jnp.float32)

    # Example inputs: batch=2, seq=8, hidden=32 (channels-last)
    key = jax.random.PRNGKey(0)
    kx, ky = jax.random.split(key)
    x = jax.random.normal(kx, (2, 8, dim), dtype=jnp.float32)
    y = jax.random.normal(ky, (2, 8, dim), dtype=jnp.float32)

    out = addition(x, y, gamma)
    out = jax.block_until_ready(out)

    # Correctness check against pure-JAX reference
    ref = x + gamma[None, None, :] * y
    assert out.shape == x.shape
    assert out.dtype == x.dtype
    assert jnp.allclose(out, ref, atol=1e-6, rtol=1e-6), "mismatch vs reference"

    print("KERNEL_OK")
</pallas_src>

<mosaic_0001>
module attributes {stable_mosaic.version = 11 : i64} {
  func.func @_addition_kernel(%arg0: i32, %arg1: memref<1x512xf32, #tpu.memory_space<vmem>>, %arg2: memref<1x512xf32, #tpu.memory_space<vmem>>, %arg3: memref<1x512xf32, #tpu.memory_space<vmem>>, %arg4: memref<1x512xf32, #tpu.memory_space<vmem>>) attributes {dimension_semantics = [#tpu.dimension_semantics<parallel>], iteration_bounds = array<i64: 1>, scalar_prefetch = 0 : i64, scratch_operands = 0 : i64, tpu.core_type = #tpu.core_type<tc>, window_params = [{transform_indices = @transform_0, window_bounds = array<i64: 1, 512>}, {transform_indices = @transform_1, window_bounds = array<i64: 1, 512>}, {pipeline_mode = #tpu.pipeline_mode<synchronous>, transform_indices = @transform_2, window_bounds = array<i64: 1, 512>}, {transform_indices = @transform_3, window_bounds = array<i64: 1, 512>}]} {
    %c0 = arith.constant 0 : index
    %c0_0 = arith.constant 0 : index
    %0 = vector.load %arg1[%c0, %c0_0] : memref<1x512xf32, #tpu.memory_space<vmem>>, vector<1x512xf32>
    %c0_1 = arith.constant 0 : index
    %c0_2 = arith.constant 0 : index
    %1 = vector.load %arg2[%c0_1, %c0_2] : memref<1x512xf32, #tpu.memory_space<vmem>>, vector<1x512xf32>
    %c0_3 = arith.constant 0 : index
    %c0_4 = arith.constant 0 : index
    %2 = vector.load %arg3[%c0_3, %c0_4] : memref<1x512xf32, #tpu.memory_space<vmem>>, vector<1x512xf32>
    %3 = arith.mulf %1, %2 : vector<1x512xf32>
    %4 = arith.addf %0, %3 : vector<1x512xf32>
    %c0_5 = arith.constant 0 : index
    %c0_6 = arith.constant 0 : index
    %5 = vector.load %arg4[%c0_5, %c0_6] : memref<1x512xf32, #tpu.memory_space<vmem>>, vector<1x512xf32>
    tpu.vector_store %arg4[%c0_5, %c0_6], %4 {strides = array<i32>} : memref<1x512xf32, #tpu.memory_space<vmem>>, vector<1x512xf32>,
    return
  }
  func.func @transform_0(%arg0: i32) -> (i32, i32) {
    %c0_i32 = arith.constant 0 : i32
    %c0_i32_0 = arith.constant 0 : i32
    return %arg0, %c0_i32 : i32, i32
  }
  func.func @transform_1(%arg0: i32) -> (i32, i32) {
    %c0_i32 = arith.constant 0 : i32
    %c0_i32_0 = arith.constant 0 : i32
    return %arg0, %c0_i32 : i32, i32
  }
  func.func @transform_2(%arg0: i32) -> (i32, i32) {
    %c0_i32 = arith.constant 0 : i32
    %c0_i32_0 = arith.constant 0 : i32
    %c0_i32_1 = arith.constant 0 : i32
    return %c0_i32, %c0_i32_0 : i32, i32
  }
  func.func @transform_3(%arg0: i32) -> (i32, i32) {
    %c0_i32 = arith.constant 0 : i32
    %c0_i32_0 = arith.constant 0 : i32
    return %arg0, %c0_i32 : i32, i32
  }
}

</mosaic_0001>

<bundles_post_ra>
// kernel: tpu_custom_call.1
= control target key start
LH: loop header
LB: loop body
LE: loop exit
PB: predicated region body
PF: predicated region fallthrough
CT: control target
= control target key end

     0   :  { %8 = vsyncpa [#allocation3], 0  ;;  %s202_s0 = inlined_call_operand.hbm [shape: f32[1,512], index: 0, kind: input, shape index: {}]   ;;  %s203_s1 = inlined_call_operand.hbm [shape: f32[1,512], index: 1, kind: input, shape index: {}]   ;;  %s204_s2 = inlined_call_operand.vmem [shape: f32[1,512], index: 2, kind: input, shape index: {}]   ;;  %s205_s3 = inlined_call_operand.hbm [shape: f32[1,512], index: 3, kind: output, shape index: {}]  }
   0x1   :  { %9 = vsyncpa [#allocation6], 0 }
   0x2   :  { %10 = vsyncpa [#allocation4], 0  ;;  %s140_s12 = smov [#allocation2]   ;;  %s141_s14 = smov [#allocation5]  }
   0x3   :  { %s17_s13 = sshll.u32 %s140_s12, 4  ;;  %s27_s15 = sshll.u32 %s141_s14, 4  ;;  %s18_s13 = int_to_ptr.vmem [resolvable:$true] %s17_s13  ;;  %s28_s15 = int_to_ptr.vmem [resolvable:$true] %s27_s15 }
   0x4   :  { %s68_s18 = scalar_lea.hbm %s202_s0, 64 }
   0x5   :  { %p69_p0 = scmp.ne.s32.totalorder %s202_s0, %s68_s18  ;;  %p72_p1 = scmp.lt.u32.totalorder %s68_s18, %s202_s0 }
   0x7   :  { %p74_p2 = pnand %p72_p1, %p69_p0 }
   0x9   :  { %77 = shalt.err (!%p74_p2)
}
   0xa   :  { %s78_s23 = scalar_lea.vmem %s18_s13, 64  ;;  %p83_p4 = scmp.lt.s32.totalorder %s18_s13, %s18_s13 }
   0xb   :  { %p79_p3 = scmp.ne.s32.totalorder %s18_s13, %s78_s23  ;;  %p84_p5 = scmp.lt.s32.totalorder %s78_s23, %s78_s23 }
   0xd   :  { %p85_p6 = por %p84_p5, %p83_p4 }
   0xf   :  { %p86_p7 = pnand %p85_p6, %p79_p3 }
  0x11   :  { %89 = shalt.err (!%p86_p7)
}
  0x12   :  { %20 = dma.hbm_to_vmem [thread:$0]  %s202_s0, 64, %s18_s13, [#allocation3]  }
  0x13   :  { %s90_s28 = scalar_lea.hbm %s203_s1, 64 }
  0x14   :  { %p91_p8 = scmp.ne.s32.totalorder %s203_s1, %s90_s28  ;;  %p94_p9 = scmp.lt.u32.totalorder %s90_s28, %s203_s1 }
  0x16   :  { %p96_p10 = pnand %p94_p9, %p91_p8 }
  0x18   :  { %99 = shalt.err (!%p96_p10)
}
  0x19   :  { %s100_s6 = scalar_lea.vmem %s28_s15, 64  ;;  %p105_p12 = scmp.lt.s32.totalorder %s28_s15, %s28_s15 }
  0x1a   :  { %p101_p11 = scmp.ne.s32.totalorder %s28_s15, %s100_s6  ;;  %p106_p13 = scmp.lt.s32.totalorder %s100_s6, %s100_s6 }
  0x1c   :  { %p107_p0 = por %p106_p13, %p105_p12 }
  0x1e   :  { %p108_p1 = pnand %p107_p0, %p101_p11 }
  0x20   :  { %111 = shalt.err (!%p108_p1)
}
  0x21   :  { %30 = dma.hbm_to_vmem [thread:$0]  %s203_s1, 64, %s28_s15, [#allocation6]  }
  0x22   :  { %134 = dma.done.wait [#allocation3], 64  }
  0x23   :  { %135 = vsyncadd [#allocation3], 4294967232 }
  0x24   :  { %136 = dma.done.wait [#allocation6], 64  }
  0x25   :  { %137 = vsyncadd [#allocation6], 4294967232  ;;  %v44_v0 = vlaneseq  ;;  %s142_s8 = smov [#allocation7]   ;;  %v39_v1 = vld [vmem:[#allocation2] sm:$0xf] }
  0x26   :  { %s55_s9 = sshll.u32 %s142_s8, 4  ;;  %v40_v2 = vld [vmem:[#allocation5] sm:$0xf]  ;;  %v41_v3 = vld [vmem:[%s204_s2] sm:$0xf]  ;;  %s56_s9 = int_to_ptr.vmem [resolvable:$true] %s55_s9 }
  0x27   :  { %v42_v4 = vmul.f32 %v41_v3, %v40_v2  ;;  %vm46_vm0 = vcmp.lt.s32.totalorder %v44_v0, 512  ;;  %s112_s12 = scalar_lea.vmem %s56_s9, 64  ;;  %p117_p3 = scmp.lt.s32.totalorder %s56_s9, %s56_s9 }
  0x28   :  { %p113_p2 = scmp.ne.s32.totalorder %s56_s9, %s112_s12  ;;  %p118_p4 = scmp.lt.s32.totalorder %s112_s12, %s112_s12 }
  0x29   :  { %v43_v5 = vadd.f32 %v42_v4, %v39_v1 }
  0x2a   :  { %p119_p5 = por %p118_p4, %p117_p3 }
  0x2b   :  { %48 = vst.msk [vmem:[#allocation7] sm:$0xf] %vm46_vm0, %v43_v5 }
  0x2c   :  { %p120_p6 = pnand %p119_p5, %p113_p2 }
  0x2e   :  { %123 = shalt.err (!%p120_p6)
}
  0x2f   :  { %s124_s14 = scalar_lea.hbm %s205_s3, 64 }
  0x30   :  { %p125_p7 = scmp.ne.s32.totalorder %s205_s3, %s124_s14  ;;  %p128_p8 = scmp.lt.u32.totalorder %s124_s14, %s205_s3 }
  0x32   :  { %p130_p9 = pnand %p128_p8, %p125_p7 }
  0x34   :  { %133 = shalt.err (!%p130_p9)
}
  0x35   :  { %58 = dma.vmem_to_hbm [thread:$0]  %s56_s9, 64, %s205_s3, [#allocation4]  }
  0x36   :  { %138 = dma.done.wait [#allocation4], 64  }
  0x37   :  { %139 = vsyncadd [#allocation4], 4294967232 }
  0x38   :  { %62 = vsyncpa [#allocation3], 1 }
  0x39   :  { %63 = vsyncpa [#allocation6], 1 }
  0x3a   :  { %64 = vsyncpa [#allocation4], 1 }

</bundles_post_ra>
